<compile_context>
chip_gen: v7x
topology: tpu7x:2x2x1
jax: 0.10.0
libtpu: 0.0.40
codegen_flags: <defaults>
</compile_context>

<pallas_src>
import jax
import jax.numpy as jnp
from jax import lax
from jax.experimental import pallas as pl
from jax.experimental.pallas import tpu as pltpu


def _round_up(x, m):
    return ((x + m - 1) // m) * m


def _correlation_kernel(a_ref, b_ref, ia_ref, ib_ref, o_ref):
    # a_ref : (1, Cp, tm)  C-major featA tile (input dtype)
    # b_ref : (1, Cp, tn)  C-major featB tile (input dtype)
    # ia_ref: (1, 1, tm)   f32 reciprocal L2 norms of A columns
    # ib_ref: (1, 1, tn)   f32 reciprocal L2 norms of B columns
    # o_ref : (1, tm, tn)  normalized correlation tile
    a = a_ref[0]
    b = b_ref[0]
    inv_a = ia_ref[0]          # (1, tm)
    inv_b = ib_ref[0]          # (1, tn)

    # Pre-scale A by its reciprocal norm: (1,tm) broadcast over (Cp,tm) is
    # lane-aligned (tm == lanes), so no cross-lane relayout / XLU traffic.
    a_scaled = (a.astype(jnp.float32) * inv_a).astype(b.dtype)

    # Contract over channels on the MXU: (Cp,tm) x (Cp,tn) -> (tm,tn).
    # TODO(synk): if Mosaic inserts a per-step relayout for the transposed LHS,
    # cache a pre-transposed (tm,Cp) copy under pl.when(j==0) instead.
    s = lax.dot_general(
        a_scaled, b, (((0,), (0,)), ((), ())),
        preferred_element_type=jnp.float32,
    )

    # B's reciprocal norm is lane-aligned on the (tm,tn) output as well.
    o_ref[0] = (s * inv_b).astype(o_ref.dtype)


def correlation(featA, featB, *, tm=1024, tn=512, out_dtype=jnp.float32):
    """featA: [B,C,H1,W1], featB: [B,C,H2,W2] -> [B,H1,W1,H2,W2]."""
    B, C, H1, W1 = featA.shape
    B2, C2, H2, W2 = featB.shape
    assert B == B2 and C == C2

    M = H1 * W1
    N = H2 * W2

    # Keep bf16 inputs native (no f32 upcast HBM round-trip, 2x MXU rate on
    # v6e/v7x); otherwise run in f32.  Norm math stays f32 everywhere (v5e
    # VPU/EUP have no bf16).
    if featA.dtype == jnp.bfloat16 and featB.dtype == jnp.bfloat16:
        in_dtype, c_mult = jnp.bfloat16, 16
    else:
        in_dtype, c_mult = jnp.float32, 8
    in_bytes = jnp.dtype(in_dtype).itemsize
    out_bytes = jnp.dtype(out_dtype).itemsize

    # Natural layout: flatten spatial only (no transpose) -> [B,C,M] / [B,C,N].
    a = featA.reshape(B, C, M).astype(in_dtype)
    b = featB.reshape(B, C, N).astype(in_dtype)

    # Hoisted reciprocal L2 norms (would otherwise be recomputed Np/tn resp.
    # Mp/tm times inside the kernel).  Matches the reference (no eps): a truly
    # zero feature vector yields inf/NaN, same as PyTorch's divide.
    inv_a = lax.rsqrt(jnp.sum(jnp.square(a.astype(jnp.float32)), axis=1, keepdims=True))
    inv_b = lax.rsqrt(jnp.sum(jnp.square(b.astype(jnp.float32)), axis=1, keepdims=True))

    # Pad channels to a sublane multiple (zeros don't change dot products).
    Cp = max(c_mult, _round_up(C, c_mult))
    if Cp != C:
        a = jnp.pad(a, ((0, 0), (0, Cp - C), (0, 0)))
        b = jnp.pad(b, ((0, 0), (0, Cp - C), (0, 0)))

    # Lane-dense tiles (multiples of 128), asymmetric: large tm cuts the
    # re-streamed B traffic (B is re-read once per i step).
    tm = min(tm, _round_up(M, 128))
    tn = min(tn, _round_up(N, 128))

    # Keep a few grid steps alive on small problems (megacore + pipelining).
    while B * pl.cdiv(M, tm) * pl.cdiv(N, tn) < 4 and max(tm, tn) > 128:
        if tm >= tn and tm > 128:
            tm = max(128, _round_up(tm // 2, 128))
        elif tn > 128:
            tn = max(128, _round_up(tn // 2, 128))
        else:
            break

    # Shrink to fit double-buffered VMEM (budget below v5e's 16 MiB scoped
    # default; far below v7x's 64 MiB physical VMEM).
    def _vmem_bytes(tm_, tn_):
        return 2 * (tm_ * tn_ * out_bytes
                    + Cp * tm_ * in_bytes + Cp * tn_ * in_bytes
                    + 4 * tm_ + 4 * tn_)

    vmem_budget = 14 * 1024 * 1024
    while _vmem_bytes(tm, tn) > vmem_budget and max(tm, tn) > 128:
        if tm >= tn:
            tm = max(128, _round_up(tm // 2, 128))
        else:
            tn = max(128, _round_up(tn // 2, 128))

    Mp = _round_up(M, tm)
    Np = _round_up(N, tn)
    if Mp != M:
        a = jnp.pad(a, ((0, 0), (0, 0), (0, Mp - M)))
        inv_a = jnp.pad(inv_a, ((0, 0), (0, 0), (0, Mp - M)))
    if Np != N:
        b = jnp.pad(b, ((0, 0), (0, 0), (0, Np - N)))
        inv_b = jnp.pad(inv_b, ((0, 0), (0, 0), (0, Np - N)))

    grid = (B, Mp // tm, Np // tn)

    # Truthful HBM traffic: A read once, B re-streamed Mp/tm times, output
    # written once; norm vectors are noise.
    cost = pl.CostEstimate(
        flops=2 * B * Mp * Np * Cp,
        transcendentals=0,
        bytes_accessed=(in_bytes * (B * Mp * Cp + B * Np * Cp * (Mp // tm))
                        + 4 * B * (Mp + Np)
                        + out_bytes * B * Mp * Np),
    )

    out = pl.pallas_call(
        _correlation_kernel,
        out_shape=jax.ShapeDtypeStruct((B, Mp, Np), out_dtype),
        grid_spec=pltpu.PrefetchScalarGridSpec(
            num_scalar_prefetch=0,
            grid=grid,
            in_specs=[
                pl.BlockSpec((1, Cp, tm), lambda bb, i, j: (bb, 0, i)),
                pl.BlockSpec((1, Cp, tn), lambda bb, i, j: (bb, 0, j)),
                pl.BlockSpec((1, 1, tm), lambda bb, i, j: (bb, 0, i)),
                pl.BlockSpec((1, 1, tn), lambda bb, i, j: (bb, 0, j)),
            ],
            out_specs=pl.BlockSpec((1, tm, tn), lambda bb, i, j: (bb, i, j)),
        ),
        compiler_params=pltpu.CompilerParams(
            dimension_semantics=("parallel", "parallel", "parallel"),
        ),
        cost_estimate=cost,
    )(a, b, inv_a, inv_b)

    # Drop spatial padding (zeros) and reshape to the 5-D correlation tensor.
    return out[:, :M, :N].reshape(B, H1, W1, H2, W2)


def _reference(featA, featB):
    # Pure-JAX reference matching the PyTorch module.
    corr = jnp.einsum("bcij,bckl->bijkl", featA, featB)
    norm_a = jnp.linalg.norm(featA, axis=1)          # (B, H1, W1)
    norm_b = jnp.linalg.norm(featB, axis=1)          # (B, H2, W2)
    return corr / (norm_a[:, :, :, None, None] * norm_b[:, None, None, :, :])


if __name__ == "__main__":
    key = jax.random.PRNGKey(0)
    ka, kb = jax.random.split(key)

    B, C, H, W = 2, 4, 16, 16
    featA = jax.random.normal(ka, (B, C, H, W), dtype=jnp.float32)
    featB = jax.random.normal(kb, (B, C, H, W), dtype=jnp.float32)

    out = correlation(featA, featB)
    out = jax.block_until_ready(out)

    ref = _reference(featA, featB)
    assert out.shape == (B, H, W, H, W)
    assert jnp.allclose(out, ref, atol=1e-5, rtol=1e-5), "mismatch vs reference"

    print("KERNEL_OK")
</pallas_src>

<mosaic_0001>
module attributes {stable_mosaic.version = 11 : i64} {
  func.func @_correlation_kernel(%arg0: i32, %arg1: i32, %arg2: i32, %arg3: memref<1x8x128xf32, #tpu.memory_space<vmem>>, %arg4: memref<1x8x256xf32, #tpu.memory_space<vmem>>, %arg5: memref<1x1x128xf32, #tpu.memory_space<vmem>>, %arg6: memref<1x1x256xf32, #tpu.memory_space<vmem>>, %arg7: memref<1x128x256xf32, #tpu.memory_space<vmem>>) attributes {dimension_semantics = [#tpu.dimension_semantics<parallel>, #tpu.dimension_semantics<parallel>, #tpu.dimension_semantics<parallel>], iteration_bounds = array<i64: 2, 2, 1>, scalar_prefetch = 0 : i64, scratch_operands = 0 : i64, tpu.core_type = #tpu.core_type<tc>, window_params = [{transform_indices = @transform_0, window_bounds = array<i64: 1, 8, 128>}, {transform_indices = @transform_1, window_bounds = array<i64: 1, 8, 256>}, {transform_indices = @transform_2, window_bounds = array<i64: 1, 1, 128>}, {transform_indices = @transform_3, window_bounds = array<i64: 1, 1, 256>}, {transform_indices = @transform_4, window_bounds = array<i64: 1, 128, 256>}]} {
    %c0 = arith.constant 0 : index
    %c0_0 = arith.constant 0 : index
    %c0_1 = arith.constant 0 : index
    %0 = vector.load %arg3[%c0, %c0_0, %c0_1] : memref<1x8x128xf32, #tpu.memory_space<vmem>>, vector<1x8x128xf32>
    %1 = vector.shape_cast %0 : vector<1x8x128xf32> to vector<8x128xf32>
    %c0_2 = arith.constant 0 : index
    %c0_3 = arith.constant 0 : index
    %c0_4 = arith.constant 0 : index
    %2 = vector.load %arg4[%c0_2, %c0_3, %c0_4] : memref<1x8x256xf32, #tpu.memory_space<vmem>>, vector<1x8x256xf32>
    %3 = vector.shape_cast %2 : vector<1x8x256xf32> to vector<8x256xf32>
    %c0_5 = arith.constant 0 : index
    %c0_6 = arith.constant 0 : index
    %c0_7 = arith.constant 0 : index
    %4 = vector.load %arg5[%c0_5, %c0_6, %c0_7] : memref<1x1x128xf32, #tpu.memory_space<vmem>>, vector<1x1x128xf32>
    %5 = vector.shape_cast %4 : vector<1x1x128xf32> to vector<1x128xf32>
    %c0_8 = arith.constant 0 : index
    %c0_9 = arith.constant 0 : index
    %c0_10 = arith.constant 0 : index
    %6 = vector.load %arg6[%c0_8, %c0_9, %c0_10] : memref<1x1x256xf32, #tpu.memory_space<vmem>>, vector<1x1x256xf32>
    %7 = vector.shape_cast %6 : vector<1x1x256xf32> to vector<1x256xf32>
    %8 = vector.broadcast %5 : vector<1x128xf32> to vector<8x128xf32>
    %9 = arith.mulf %1, %8 : vector<8x128xf32>
    %cst = arith.constant dense<0.000000e+00> : vector<128x256xf32>
    %10 = tpu.matmul %9, %3, %cst {dimension_numbers = #tpu.dot_dimension_numbers<[0], [0], [1], [1], [0, 1, 1, 1], [], []>} : vector<8x128xf32>, vector<8x256xf32>, vector<128x256xf32> -> vector<128x256xf32>
    %11 = vector.broadcast %7 : vector<1x256xf32> to vector<128x256xf32>
    %12 = arith.mulf %10, %11 : vector<128x256xf32>
    %c0_11 = arith.constant 0 : index
    %c0_12 = arith.constant 0 : index
    %c0_13 = arith.constant 0 : index
    %13 = vector.load %arg7[%c0_11, %c0_12, %c0_13] : memref<1x128x256xf32, #tpu.memory_space<vmem>>, vector<1x128x256xf32>
    %14 = vector.shape_cast %13 : vector<1x128x256xf32> to vector<128x256xf32>
    %15 = vector.shape_cast %12 : vector<128x256xf32> to vector<1x128x256xf32>
    tpu.vector_store %arg7[%c0_11, %c0_12, %c0_13], %15 {strides = array<i32>} : memref<1x128x256xf32, #tpu.memory_space<vmem>>, vector<1x128x256xf32>,
    return
  }
  func.func @transform_0(%arg0: i32, %arg1: i32, %arg2: i32) -> (i32, i32, i32) {
    %c0_i32 = arith.constant 0 : i32
    %c0_i32_0 = arith.constant 0 : i32
    return %arg0, %c0_i32, %arg1 : i32, i32, i32
  }
  func.func @transform_1(%arg0: i32, %arg1: i32, %arg2: i32) -> (i32, i32, i32) {
    %c0_i32 = arith.constant 0 : i32
    %c0_i32_0 = arith.constant 0 : i32
    return %arg0, %c0_i32, %arg2 : i32, i32, i32
  }
  func.func @transform_2(%arg0: i32, %arg1: i32, %arg2: i32) -> (i32, i32, i32) {
    %c0_i32 = arith.constant 0 : i32
    %c0_i32_0 = arith.constant 0 : i32
    return %arg0, %c0_i32, %arg1 : i32, i32, i32
  }
  func.func @transform_3(%arg0: i32, %arg1: i32, %arg2: i32) -> (i32, i32, i32) {
    %c0_i32 = arith.constant 0 : i32
    %c0_i32_0 = arith.constant 0 : i32
    return %arg0, %c0_i32, %arg2 : i32, i32, i32
  }
  func.func @transform_4(%arg0: i32, %arg1: i32, %arg2: i32) -> (i32, i32, i32) {
    %c0_i32 = arith.constant 0 : i32
    return %arg0, %arg1, %arg2 : i32, i32, i32
  }
}

</mosaic_0001>

<bundles_post_ra>
// kernel: tpu_custom_call.1
= control target key start
LH: loop header
LB: loop body
LE: loop exit
PB: predicated region body
PF: predicated region fallthrough
CT: control target
= control target key end

     0   :  { %s1625_s0 = inlined_call_operand.hbm [shape: f32[2,8,256], index: 0, kind: input, shape index: {}]   ;;  %s1626_s1 = inlined_call_operand.hbm [shape: f32[2,8,256], index: 1, kind: input, shape index: {}]   ;;  %s1627_s2 = inlined_call_operand.vmem [shape: f32[2,1,256], index: 2, kind: input, shape index: {}]   ;;  %s1628_s3 = inlined_call_operand.vmem [shape: f32[2,1,256], index: 3, kind: input, shape index: {}]   ;;  %s1629_s4 = inlined_call_operand.hbm [shape: f32[2,256,256], index: 4, kind: output, shape index: {}]  }
   0x1   :  { %1641 = sst [smem:[#allocation15_spill]] %s1628_s3 }
   0x2   :  { %1642 = sst [smem:[#allocation16_spill]] %s1629_s4 }
   0x3   :  { %9 = vsyncpa [#allocation3], 0 }
   0x4   :  { %11 = vsyncpa [#allocation3 + $0x1], 0 }
   0x5   :  { %12 = vsyncpa [#allocation6], 0 }
   0x6   :  { %14 = vsyncpa [#allocation6 + $0x1], 0 }
   0x7   :  { %15 = vsyncpa [#allocation4], 0 }
   0x8   :  { %17 = vsyncpa [#allocation4 + $0x1], 0  ;;  %s1217_s15 = smov 0   ;;  %s1219_s16 = smov 0  }
   0x9   :  { %s1221_s17 = smov 0   ;;  %s1223_s18 = smov 0  }
   0xa   :  { %s1225_s19 = smov 0   ;;  %s1227_s20 = smov 0  }
   0xb   :  { %s1229_s21 = smov 0   ;;  %s1231_s22 = smov 0  }
   0xc   :  { %s1233_s23 = smov 0   ;;  %s1235_s24 = smov 0  }
   0xd   :  { %s1237_s25 = smov 0  }
   0xe LB: > { %1643 = sst [smem:[#allocation11_spill]] %s1156_s18  ;;  %s844_s26 = sadd.s32 4294967295, %s1184_s25   ;;  %s1184_s25 = sphi %s1237_s25, %s23_s25   ;;  %s1180_s24 = sphi %s1235_s24, %s1680_s24   ;;  %s1176_s23 = sphi %s1233_s23, %s1679_s23   ;;  %s1172_s22 = sphi %s1231_s22, %s1678_s22   ;;  %s1168_s21 = sphi %s1229_s21, %s1677_s21   ;;  %s1164_s20 = sphi %s1227_s20, %s1676_s20   ;;  %s1160_s19 = sphi %s1225_s19, %s1675_s19   ;;  %s1156_s18 = sphi %s1223_s18, %s1674_s18   ;;  %s1152_s17 = sphi %s1221_s17, %s1673_s17   ;;  %s1148_s16 = sphi %s1219_s16, %s1672_s16   ;;  %s1144_s15 = sphi %s1217_s15, %s1671_s15  }
   0xf   : > { %s845_s27 = sadd.s32 4294967294, %s1184_s25   ;;  %s38_s28 = sadd.s32 1, %s1176_s23 }
  0x10   : > { %s42_s29 = sadd.s32 1, %s1180_s24  ;;  %p40_p0 = scmp.ge.s32.totalorder %s38_s28, 2 }
  0x11   : > { %s51_s30 = sadd.s32 1, %s1164_s20  ;;  %p58_p1 = scmp.ne.s32.totalorder %s1164_s20, %s1160_s19 }
  0x12   : > { %p1636_p2 = scmp.eq.s32.totalorder %s1184_s25, 0  ;;  %s1682_s28 = smov (%p40_p0, %s38_s28), 0 }
  0x13   : > { %1644 = sst [smem:[#allocation12_spill]] %s1682_s28  ;;  %s1684_s29 = smov (!%p40_p0, %s42_s29), %s1180_s24 }
  0x14   : > { %s47_s5 = ssub.s32 %s1176_s23, %s1682_s28  ;;  %p1287_p3 = por %p1636_p2, %p58_p1 }
  0x15   : > { %p44_p4 = scmp.ge.s32.totalorder %s1684_s29, 2  ;;  %p64_p5 = scmp.ne.s32.totalorder %s1160_s19, %s1156_s18 }
  0x16   : > { %p1293_p6 = scmp.eq.s32.totalorder %s844_s26, 0  ;;  %p176_p7 = scmp.eq.s32.totalorder %s844_s26, 3 }
  0x17   : > { %s1686_s29 = smov (%p44_p4, %s1684_s29), 0  ;;  %p182_p10 = scmp.eq.s32.totalorder %s845_s27, 3 }
  0x18   : > { %1647 = sst [smem:[#allocation13_spill]] %s1686_s29  ;;  %p1301_p8 = por %p1293_p6, %p64_p5 }
  0x19   : > { %p1305_p9 = por %p176_p7, %p58_p1  ;;  %s1311_s10 = ssub.s32 %s1180_s24, %s1686_s29 }
  0x1a   : > { %s1648_s8 = scalar_select %p1301_p8, 1, 0 }
  0x1b   : > { %s1649_s9 = scalar_select %p1305_p9, 1, 0 }
  0x1c   : > { %s48_s11 = sor.u32 %s47_s5, %s1311_s10  ;;  %p1315_p13 = por %p182_p10, %p64_p5 }
  0x1d   : > { %1650 = sst [smem:[#allocation14_spill]] %s1649_s9  ;;  %p49_p12 = scmp.eq.s32.totalorder %s48_s11, 0 }
  0x1e   : > { %s1651_s12 = scalar_select %p1315_p13, 1, 0 }
  0x1f   : > { %p1637_p0 = scmp.lt.s32.totalorder %s1184_s25, 4  ;;  %s202_s14 = sand.u32 1, %s1164_s20  }
  0x20   : > { %s1321_s13 = scalar_select %p49_p12, %s1164_s20, %s51_s30  }
  0x21   : > { %s849_s26 = sshll.u32 %s1180_s24, 1  ;;  %s848_s29 = sshll.u32 %s202_s14, 3 }
  0x22   : > { %s211_s28 = sadd.s32 %s1176_s23, %s849_s26  ;;  %s206_s27 = scalar_lea.vmem [#allocation2], %s848_s29 }
  0x23   : > { %s850_s18 = sshll.u32 %s211_s28, 7  ;;  %s215_s4 = sshll.u32 %s206_s27, 4  ;;  %s1331_s4 = int_to_ptr.vmem [resolvable:$true] %s215_s4 }
  0x24   : > { %s1329_s3 = scalar_lea.hbm %s1625_s0, %s850_s18  ;;  %p1337_p1 = pnand %p1637_p0, %p1287_p3 }
  0x25   : > { %s203_s28 = scalar_lea.sflag [#allocation3], %s202_s14  ;;  %s998_s29 = scalar_lea.hbm %s1329_s3, 128 }
  0x26   : > { %p999_p7 = scmp.ne.s32.totalorder %s1329_s3, %s998_s29  ;;  %p1000_p10 = pneg %p1337_p1 }
  0x27   : > { %s1003_s9 = scalar_lea.hbm %s1625_s0, 512  ;;  %p1004_p3 = scmp.lt.u32.totalorder %s1329_s3, %s1625_s0 }
  0x28   : > { %p1001_p12 = pnand %p1000_p10, %p999_p7  ;;  %p1005_p0 = scmp.lt.u32.totalorder %s1003_s9, %s998_s29 }
  0x29   : > { %p1007_p4 = scmp.lt.u32.totalorder %s998_s29, %s1329_s3 }
  0x2a   : > { %p1002_p2 = pneg %p1001_p12  ;;  %p1006_p11 = por %p1005_p0, %p1004_p3 }
  0x2c   : > { %p1008_p5 = por %p1007_p4, %p1006_p11 }
  0x2e   : > { %p1009_p13 = pnand %p1008_p5, %p1002_p2 }
  0x30   : > { %1012 = shalt.err (!%p1009_p13)
}
  0x31   : > { %s1013_s14 = scalar_lea.vmem %s1331_s4, 128  ;;  %s1186_s27 = smov [#allocation2]  }
  0x32   : > { %p1014_p7 = scmp.ne.s32.totalorder %s1331_s4, %s1013_s14  ;;  %s1018_s5 = sshll.u32 %s1186_s27, 4  ;;  %s1019_s5 = int_to_ptr.vmem [resolvable:$false] %s1018_s5 }
  0x33   : > { %s1020_s18 = scalar_lea.vmem %s1019_s5, 256  ;;  %p1021_p8 = scmp.lt.s32.totalorder %s1331_s4, %s1019_s5 }
  0x34   : > { %p1016_p12 = pnand %p1014_p7, %p1000_p10  ;;  %p1022_p0 = scmp.lt.s32.totalorder %s1020_s18, %s1013_s14 }
  0x36   : > { %p1017_p9 = pneg %p1016_p12  ;;  %p1023_p3 = por %p1022_p0, %p1021_p8 }
  0x38   : > { %p1024_p11 = pnand %p1023_p3, %p1017_p9 }
  0x3a   : > { %1027 = shalt.err (!%p1024_p11)
}
  0x3b   : > { %897 = dma.hbm_to_vmem [thread:$0]  (!%p1337_p1), %s1329_s3, 128, %s1331_s4, %s203_s28  }
  0x3c   : > { %p1653_p2 = scmp.lt.s32.totalorder %s1184_s25, 5  ;;  %p1654_p8 = scmp.ge.s32.totalorder %s1184_s25, 1 }
  0x3d   : > { %s79_s29 = sadd.s32 1, %s1152_s17  ;;  %p1656_p13 = scmp.eq.s32.totalorder %s1311_s10, 0 }
  0x3e   : > { %p1372_p9 = pnand %p1654_p8, %p1653_p2  ;;  %p86_p4 = scmp.ne.s32.totalorder %s1152_s17, %s1148_s16 }
  0x3f   : > { %s1380_s6 = scalar_select %p1656_p13, %s1152_s17, %s79_s29  }
  0x40   : > { %p92_p5 = scmp.ne.s32.totalorder %s1148_s16, %s1144_s15  ;;  %s222_s9 = sand.u32 1, %s1152_s17  }
  0x41   : > { %s884_s11 = sshll.u32 %s1180_s24, 8  ;;  %p1657_p10 = scmp.eq.s32.totalorder %s1184_s25, 0 }
  0x42   : > { %p1392_p12 = por %p92_p5, %p1293_p6  ;;  %s851_s3 = sshll.u32 %s222_s9, 4 }
  0x43   : > { %p88_p7 = por %p86_p4, %p1657_p10  ;;  %s1399_s14 = scalar_lea.hbm %s1626_s1, %s884_s11 }
  0x44   : > { %s1658_s26 = scalar_select %p1392_p12, 1, 0 }
  0x45   : > { %s226_s15 = scalar_lea.vmem [#allocation5], %s851_s3  ;;  %p1659_p1 = scmp.lt.s32.totalorder %s1184_s25, 4 }
  0x46   : > { %s236_s10 = sshll.u32 %s226_s15, 4  ;;  %s223_s7 = scalar_lea.sflag [#allocation6], %s222_s9  ;;  %s1407_s10 = int_to_ptr.vmem [resolvable:$true] %s236_s10 }
  0x47   : > { %p1403_p0 = pnand %p1659_p1, %p88_p7  ;;  %s1028_s5 = scalar_lea.hbm %s1399_s14, 256 }
  0x48   : > { %p1029_p6 = scmp.ne.s32.totalorder %s1399_s14, %s1028_s5  ;;  %s1033_s11 = scalar_lea.hbm %s1626_s1, 512 }
  0x49   : > { %p1030_p3 = pneg %p1403_p0  ;;  %p1034_p8 = scmp.lt.u32.totalorder %s1399_s14, %s1626_s1 }
  0x4a   : > { %p1035_p13 = scmp.lt.u32.totalorder %s1033_s11, %s1028_s5  ;;  %p1037_p5 = scmp.lt.u32.totalorder %s1028_s5, %s1399_s14 }
  0x4b   : > { %p1031_p11 = pnand %p1030_p3, %p1029_p6 }
  0x4c   : > { %p1036_p4 = por %p1035_p13, %p1034_p8 }
  0x4d   : > { %p1032_p2 = pneg %p1031_p11 }
  0x4e   : > { %p1038_p10 = por %p1037_p5, %p1036_p4 }
  0x50   : > { %p1039_p7 = pnand %p1038_p10, %p1032_p2 }
  0x52   : > { %1042 = shalt.err (!%p1039_p7)
}
  0x53   : > { %s1043_s9 = scalar_lea.vmem %s1407_s10, 256  ;;  %s1187_s28 = smov [#allocation5]  }
  0x54   : > { %p1044_p1 = scmp.ne.s32.totalorder %s1407_s10, %s1043_s9  ;;  %s1048_s15 = sshll.u32 %s1187_s28, 4  ;;  %s1049_s15 = int_to_ptr.vmem [resolvable:$false] %s1048_s15 }
  0x55   : > { %s1050_s18 = scalar_lea.vmem %s1049_s15, 512  ;;  %p1051_p12 = scmp.lt.s32.totalorder %s1407_s10, %s1049_s15 }
  0x56   : > { %p1046_p6 = pnand %p1044_p1, %p1030_p3  ;;  %p1052_p8 = scmp.lt.s32.totalorder %s1050_s18, %s1043_s9 }
  0x58   : > { %p1047_p11 = pneg %p1046_p6  ;;  %p1053_p13 = por %p1052_p8, %p1051_p12 }
  0x5a   : > { %p1054_p4 = pnand %p1053_p13, %p1047_p11 }
  0x5c   : > { %1057 = shalt.err (!%p1054_p4)
}
  0x5d   : > { %900 = dma.hbm_to_vmem [thread:$0]  (!%p1403_p0), %s1399_s14, 256, %s1407_s10, %s223_s7  }
  0x5e   : > { %267 = sbr.rel (%p1372_p9) target bundleno = 535 (0x217), region = 36  ;;  %s1437_s5 = sand.u32 (!%p1372_p9), 1, %s1160_s19  }
  0x5f   : > { %s855_s29 = sshll.u32 (!%p1372_p9), %s1437_s5, 3  ;;  %s270_s11 = scalar_lea.sflag (!%p1372_p9), [#allocation3], %s1437_s5 }
  0x60   : > { %s273_s3 = scalar_lea.vmem (!%p1372_p9), [#allocation2], %s855_s29  ;;  %p1661_p12 = scmp.ne.s32.totalorder (!%p1372_p9), %s1648_s8, 0 }
  0x65   : > { %1131 = dma.done.wait (%p1661_p12), %s270_s11, 128  }
  0x66   : > { %1133 = vsyncadd (%p1661_p12), %s270_s11, 4294967168  ;;  %s278_s14 = sand.u32 1, %s1148_s16   ;;  %p1662_p9 = scmp.ne.s32.totalorder %s1658_s26, 0 }
  0x67   : > { %s856_s10 = sshll.u32 %s278_s14, 4  ;;  %s279_s30 = scalar_lea.sflag [#allocation6], %s278_s14 }
  0x68   : > { %s282_s27 = scalar_lea.vmem [#allocation5], %s856_s10 }
  0x69   : > { %1135 = dma.done.wait (%p1662_p9), %s279_s30, 256  }
  0x6a   : > { %1137 = vsyncadd (%p1662_p9), %s279_s30, 4294967040  ;;  %p328_p0 = scmp.lt.s32.totalorder %s1172_s22, 1  ;;  %p330_p3 = scmp.lt.s32.totalorder %s1168_s21, 1  ;;  %v1188_v0 = vmov 0.0   ;;  %v346_v1 = vld [vmem:[%s273_s3] sm:$0xff]  ;;  %v347_v5 = vld [vmem:[%s282_s27] sm:$0xff]  ;;  %v601_v22 = vlaneseq }
  0x6b   : > { %503 = vmatprep.mubr.f32.mxu0 %v1188_v0  ;;  %551 = vmatprep.mubr.f32.mxu1 %v1188_v0  ;;  %v348_v3 = vld [vmem:[%s282_s27 + $0x8] sm:$0xff]  ;;  %vm390_vm0 = vcmask 64512   ;;  %s1663_s11 = sld [smem:[#allocation15_spill]]  ;;  %s857_s14 = sshll.u32 %s1437_s5, 8 }
  0x6c   : > { %s1453_s8 = scalar_select %p328_p0, %s1172_s22, 1  ;;  %439 = vmatprep.subr.mxu0 %v348_v3  ;;  %886 = vmatprep.subr.mxu1 %v348_v3  ;;  %v602_v23 = vshrl.u32 %v601_v22, 7 }
  0x6d   : > { %s331_s7 = scalar_select %p330_p3, %s1168_s21, 1  ;;  %440 = vmatpush1.msra.mxu0 %v347_v5  ;;  %887 = vmatpush1.msra.mxu1 %v347_v5 }
  0x6e   : > { %s858_s4 = sshll.u32 %s1453_s8, 1  ;;  %v603_v24 = vsub.s32 0, %v602_v23  ;;  %v607_v26 = vsub.s32 1, %v602_v23  ;;  %s1490_s10 = scalar_lea.vmem [#allocation7], %s857_s14 }
  0x6f   : > { %s333_s9 = sadd.s32 %s858_s4, %s331_s7  ;;  %s885_s30 = sshll.u32 %s1168_s21, 5 }
  0x70   : > { %s334_s15 = scalar_lea.vmem %s1627_s2, %s333_s9  ;;  %s880_s27 = sshll.u32 %s1172_s22, 6 }
  0x71   : > { %v860_v2 = vld [vmem:[%s334_s15] ss:$0 sm:$0xff]  ;;  %s342_s3 = scalar_lea.vmem %s1663_s11, %s858_s4  ;;  %s691_s8 = sadd.s32 %s885_s30, %s880_s27 }
  0x72   : > { %v357_v4 = vmul.f32 %v860_v2, %v346_v1  ;;  %v350_v25 = vld [vmem:[%s342_s3] sm:$0x3]  ;;  %s1664_s7 = sld [smem:[#allocation14_spill]]  ;;  %s881_s21 = sshll.u32 %s691_s8, 7 }
  0x73   : > { %v1484_v27 = vrot.slane %v350_v25, %v603_v24  ;;  %v1486_v28 = vrot.slane %v350_v25, %v607_v26  ;;  %s694_s22 = sshll.u32 %s1490_s10, 4  ;;  %s1665_s28 = sld [smem:[#allocation16_spill]]  ;;  %s1559_s22 = int_to_ptr.vmem [resolvable:$true] %s694_s22 }
  0x74   : > { %358 = vxpose.xlu0.b32.start.end [1/1] (short) %v357_v4, 128  ;;  %s676_s15 = scalar_lea.sflag [#allocation4], %s1437_s5  ;;  %s1058_s18 = scalar_lea.vmem %s1559_s22, 4096 }
  0x75   : > { %p1059_p2 = scmp.ne.s32.totalorder %s1559_s22, %s1058_s18  ;;  %s1189_s29 = smov [#allocation7]  }
  0x76   : > { %s1062_s11 = sshll.u32 %s1189_s29, 4  ;;  %s1063_s11 = int_to_ptr.vmem [resolvable:$false] %s1062_s11 }
  0x77   : > { %s1064_s3 = scalar_lea.vmem %s1063_s11, 8192  ;;  %p1065_p1 = scmp.lt.s32.totalorder %s1559_s22, %s1063_s11 }
  0x78   : > { %p1666_p5 = scmp.ne.s32.totalorder %s1664_s7, 0  ;;  %p1066_p6 = scmp.lt.s32.totalorder %s1064_s3, %s1058_s18 }
  0x79   : > { %s1557_s26 = scalar_lea.hbm %s1665_s28, %s881_s21 }
  0x7a   : > { %p1060_p10 = pnand %p1059_p2, %p1666_p5  ;;  %p1067_p11 = por %p1066_p6, %p1065_p1 }
  0x7c   : > { %p1061_p7 = pneg %p1060_p10 }
  0x7e   : > { %p1068_p8 = pnand %p1067_p11, %p1061_p7 }
  0xf4   : > { %v374_v6 = vpop.trf.xlu0 }
  0xf5   : > { %861 = vmatmul.mubr.msk.f32.vlgmr.msra.gmra.mrb[0].mxu0 %vm390_vm0, %v374_v6 }
  0xf6   : > { %509 = vmatprep.mubr.f32.mxu0 %v1188_v0 }
  0xf8   : > { %v375_v7 = vpop.trf.xlu0 }
  0xf9   : > { %862 = vmatmul.mubr.msk.f32.gmra.mrb[2].mxu0 %vm390_vm0, %v375_v7 }
  0xfa   : > { %515 = vmatprep.mubr.f32.mxu0 %v1188_v0 }
  0xfc   : > { %v376_v8 = vpop.trf.xlu0 }
  0xfd   : > { %863 = vmatmul.mubr.msk.f32.gmra.mrb[4].mxu0 %vm390_vm0, %v376_v8 }
  0xfe   : > { %521 = vmatprep.mubr.f32.mxu0 %v1188_v0 }
 0x100   : > { %v377_v9 = vpop.trf.xlu0 }
 0x101   : > { %864 = vmatmul.mubr.msk.f32.gmra.mrb[6].mxu0 %vm390_vm0, %v377_v9 }
 0x102   : > { %527 = vmatprep.mubr.f32.mxu0 %v1188_v0 }
 0x104   : > { %v378_v10 = vpop.trf.xlu0 }
 0x105   : > { %865 = vmatmul.mubr.msk.f32.gmra.mrb[8].mxu0 %vm390_vm0, %v378_v10 }
 0x106   : > { %533 = vmatprep.mubr.f32.mxu0 %v1188_v0 }
 0x108   : > { %v379_v11 = vpop.trf.xlu0 }
 0x109   : > { %866 = vmatmul.mubr.msk.f32.gmra.mrb[10].mxu0 %vm390_vm0, %v379_v11 }
 0x10a   : > { %539 = vmatprep.mubr.f32.mxu0 %v1188_v0 }
 0x10c   : > { %v380_v12 = vpop.trf.xlu0 }
 0x10d   : > { %867 = vmatmul.mubr.msk.f32.gmra.mrb[12].mxu0 %vm390_vm0, %v380_v12 }
 0x10e   : > { %545 = vmatprep.mubr.f32.mxu0 %v1188_v0 }
 0x110   : > { %v381_v13 = vpop.trf.xlu0 }
 0x111   : > { %868 = vmatmul.mubr.msk.f32.gmra.mrb[14].mxu0 %vm390_vm0, %v381_v13 }
 0x114   : > { %v382_v14 = vpop.trf.xlu0 }
 0x115   : > { %869 = vmatmul.mubr.msk.f32.vlgmr.msra.gmra.mrb[0].mxu1 %vm390_vm0, %v382_v14 }
 0x116   : > { %557 = vmatprep.mubr.f32.mxu1 %v1188_v0 }
 0x118   : > { %v383_v15 = vpop.trf.xlu0 }
 0x119   : > { %870 = vmatmul.mubr.msk.f32.gmra.mrb[2].mxu1 %vm390_vm0, %v383_v15 }
 0x11a   : > { %563 = vmatprep.mubr.f32.mxu1 %v1188_v0 }
 0x11c   : > { %v384_v16 = vpop.trf.xlu0 }
 0x11d   : > { %871 = vmatmul.mubr.msk.f32.gmra.mrb[4].mxu1 %vm390_vm0, %v384_v16 }
 0x11e   : > { %569 = vmatprep.mubr.f32.mxu1 %v1188_v0 }
 0x120   : > { %v385_v17 = vpop.trf.xlu0 }
 0x121   : > { %872 = vmatmul.mubr.msk.f32.gmra.mrb[6].mxu1 %vm390_vm0, %v385_v17 }
 0x122   : > { %575 = vmatprep.mubr.f32.mxu1 %v1188_v0 }
 0x124   : > { %v386_v18 = vpop.trf.xlu0 }
 0x125   : > { %873 = vmatmul.mubr.msk.f32.gmra.mrb[8].mxu1 %vm390_vm0, %v386_v18 }
 0x126   : > { %581 = vmatprep.mubr.f32.mxu1 %v1188_v0 }
 0x128   : > { %v387_v19 = vpop.trf.xlu0 }
 0x129   : > { %874 = vmatmul.mubr.msk.f32.gmra.mrb[10].mxu1 %vm390_vm0, %v387_v19 }
 0x12a   : > { %587 = vmatprep.mubr.f32.mxu1 %v1188_v0 }
 0x12c   : > { %v388_v20 = vpop.trf.xlu0 }
 0x12d   : > { %875 = vmatmul.mubr.msk.f32.gmra.mrb[12].mxu1 %vm390_vm0, %v388_v20 }
 0x12e   : > { %593 = vmatprep.mubr.f32.mxu1 %v1188_v0 }
 0x130   : > { %v389_v21 = vpop.trf.xlu0 }
 0x131   : > { %876 = vmatmul.mubr.msk.f32.gmra.mrb[14].mxu1 %vm390_vm0, %v389_v21 }
 0x1c8   : > { %v505_v29 = vpop.f32.mrb[0].mxu0 }
 0x1c9   : > { %v611_v30 = vmul.f32 %v1484_v27, %v505_v29  ;;  %v507_v31 = vpop.f32.mrb[1].mxu0 }
 0x1ca   : > { %v612_v32 = vmul.f32 %v1486_v28, %v507_v31 }
 0x1cb   : > { %643 = vst [vmem:[%s1490_s10] sm:$0xff] %v611_v30 }
 0x1cc   : > { %644 = vst [vmem:[%s1490_s10 + $0x8] sm:$0xff] %v612_v32  ;;  %v511_v33 = vpop.f32.mrb[2].mxu0 }
 0x1cd   : > { %v613_v34 = vmul.f32 %v1484_v27, %v511_v33  ;;  %v513_v35 = vpop.f32.mrb[3].mxu0 }
 0x1ce   : > { %v614_v36 = vmul.f32 %v1486_v28, %v513_v35 }
 0x1cf   : > { %645 = vst [vmem:[%s1490_s10 + $0x10] sm:$0xff] %v613_v34 }
 0x1d0   : > { %646 = vst [vmem:[%s1490_s10 + $0x18] sm:$0xff] %v614_v36  ;;  %v517_v37 = vpop.f32.mrb[4].mxu0 }
 0x1d1   : > { %v615_v38 = vmul.f32 %v1484_v27, %v517_v37  ;;  %v519_v39 = vpop.f32.mrb[5].mxu0 }
 0x1d2   : > { %v616_v40 = vmul.f32 %v1486_v28, %v519_v39 }
 0x1d3   : > { %647 = vst [vmem:[%s1490_s10 + $0x20] sm:$0xff] %v615_v38 }
 0x1d4   : > { %648 = vst [vmem:[%s1490_s10 + $0x28] sm:$0xff] %v616_v40  ;;  %v523_v41 = vpop.f32.mrb[6].mxu0 }
 0x1d5   : > { %v617_v42 = vmul.f32 %v1484_v27, %v523_v41  ;;  %v525_v43 = vpop.f32.mrb[7].mxu0 }
 0x1d6   : > { %v618_v44 = vmul.f32 %v1486_v28, %v525_v43 }
 0x1d7   : > { %649 = vst [vmem:[%s1490_s10 + $0x30] sm:$0xff] %v617_v42 }
 0x1d8   : > { %650 = vst [vmem:[%s1490_s10 + $0x38] sm:$0xff] %v618_v44  ;;  %v529_v45 = vpop.f32.mrb[8].mxu0 }
 0x1d9   : > { %v619_v46 = vmul.f32 %v1484_v27, %v529_v45  ;;  %v531_v47 = vpop.f32.mrb[9].mxu0 }
 0x1da   : > { %v620_v48 = vmul.f32 %v1486_v28, %v531_v47 }
 0x1db   : > { %651 = vst [vmem:[%s1490_s10 + $0x40] sm:$0xff] %v619_v46 }
 0x1dc   : > { %652 = vst [vmem:[%s1490_s10 + $0x48] sm:$0xff] %v620_v48  ;;  %v535_v49 = vpop.f32.mrb[10].mxu0 }
 0x1dd   : > { %v621_v50 = vmul.f32 %v1484_v27, %v535_v49  ;;  %v537_v51 = vpop.f32.mrb[11].mxu0 }
 0x1de   : > { %v622_v52 = vmul.f32 %v1486_v28, %v537_v51 }
 0x1df   : > { %653 = vst [vmem:[%s1490_s10 + $0x50] sm:$0xff] %v621_v50 }
 0x1e0   : > { %654 = vst [vmem:[%s1490_s10 + $0x58] sm:$0xff] %v622_v52  ;;  %v541_v53 = vpop.f32.mrb[12].mxu0 }
 0x1e1   : > { %v623_v54 = vmul.f32 %v1484_v27, %v541_v53  ;;  %v543_v55 = vpop.f32.mrb[13].mxu0 }
 0x1e2   : > { %v624_v56 = vmul.f32 %v1486_v28, %v543_v55 }
 0x1e3   : > { %655 = vst [vmem:[%s1490_s10 + $0x60] sm:$0xff] %v623_v54 }
 0x1e4   : > { %656 = vst [vmem:[%s1490_s10 + $0x68] sm:$0xff] %v624_v56  ;;  %v547_v57 = vpop.f32.mrb[14].mxu0 }
 0x1e5   : > { %v625_v58 = vmul.f32 %v1484_v27, %v547_v57  ;;  %v549_v59 = vpop.f32.mrb[15].mxu0 }
 0x1e6   : > { %v626_v60 = vmul.f32 %v1486_v28, %v549_v59 }
 0x1e7   : > { %657 = vst [vmem:[%s1490_s10 + $0x70] sm:$0xff] %v625_v58 }
 0x1e8   : > { %658 = vst [vmem:[%s1490_s10 + $0x78] sm:$0xff] %v626_v60  ;;  %v553_v61 = vpop.f32.mrb[0].mxu1 }
 0x1e9   : > { %v627_v62 = vmul.f32 %v1484_v27, %v553_v61  ;;  %v555_v63 = vpop.f32.mrb[1].mxu1 }
 0x1ea   : > { %v628_v0 = vmul.f32 %v1486_v28, %v555_v63 }
 0x1eb   : > { %659 = vst [vmem:[%s1490_s10 + $0x80] sm:$0xff] %v627_v62 }
 0x1ec   : > { %660 = vst [vmem:[%s1490_s10 + $0x88] sm:$0xff] %v628_v0  ;;  %v559_v1 = vpop.f32.mrb[2].mxu1 }
 0x1ed   : > { %v629_v2 = vmul.f32 %v1484_v27, %v559_v1  ;;  %v561_v3 = vpop.f32.mrb[3].mxu1 }
 0x1ee   : > { %v630_v4 = vmul.f32 %v1486_v28, %v561_v3 }
 0x1ef   : > { %661 = vst [vmem:[%s1490_s10 + $0x90] sm:$0xff] %v629_v2 }
 0x1f0   : > { %662 = vst [vmem:[%s1490_s10 + $0x98] sm:$0xff] %v630_v4  ;;  %v565_v5 = vpop.f32.mrb[4].mxu1 }
 0x1f1   : > { %v631_v6 = vmul.f32 %v1484_v27, %v565_v5  ;;  %v567_v7 = vpop.f32.mrb[5].mxu1 }
 0x1f2   : > { %v632_v8 = vmul.f32 %v1486_v28, %v567_v7 }
 0x1f3   : > { %663 = vst [vmem:[%s1490_s10 + $0xa0] sm:$0xff] %v631_v6 }
 0x1f4   : > { %664 = vst [vmem:[%s1490_s10 + $0xa8] sm:$0xff] %v632_v8  ;;  %v571_v9 = vpop.f32.mrb[6].mxu1 }
 0x1f5   : > { %v633_v10 = vmul.f32 %v1484_v27, %v571_v9  ;;  %v573_v11 = vpop.f32.mrb[7].mxu1 }
 0x1f6   : > { %v634_v12 = vmul.f32 %v1486_v28, %v573_v11 }
 0x1f7   : > { %665 = vst [vmem:[%s1490_s10 + $0xb0] sm:$0xff] %v633_v10 }
 0x1f8   : > { %666 = vst [vmem:[%s1490_s10 + $0xb8] sm:$0xff] %v634_v12  ;;  %v577_v13 = vpop.f32.mrb[8].mxu1 }
 0x1f9   : > { %v635_v14 = vmul.f32 %v1484_v27, %v577_v13  ;;  %v579_v15 = vpop.f32.mrb[9].mxu1 }
 0x1fa   : > { %v636_v16 = vmul.f32 %v1486_v28, %v579_v15 }
 0x1fb   : > { %667 = vst [vmem:[%s1490_s10 + $0xc0] sm:$0xff] %v635_v14 }
 0x1fc   : > { %668 = vst [vmem:[%s1490_s10 + $0xc8] sm:$0xff] %v636_v16  ;;  %v583_v17 = vpop.f32.mrb[10].mxu1 }
 0x1fd   : > { %v637_v18 = vmul.f32 %v1484_v27, %v583_v17  ;;  %v585_v19 = vpop.f32.mrb[11].mxu1 }
 0x1fe   : > { %v638_v20 = vmul.f32 %v1486_v28, %v585_v19 }
 0x1ff   : > { %669 = vst [vmem:[%s1490_s10 + $0xd0] sm:$0xff] %v637_v18 }
 0x200   : > { %670 = vst [vmem:[%s1490_s10 + $0xd8] sm:$0xff] %v638_v20  ;;  %v589_v21 = vpop.f32.mrb[12].mxu1 }
 0x201   : > { %v639_v22 = vmul.f32 %v1484_v27, %v589_v21  ;;  %v591_v23 = vpop.f32.mrb[13].mxu1 }
 0x202   : > { %v640_v24 = vmul.f32 %v1486_v28, %v591_v23 }
 0x203   : > { %671 = vst [vmem:[%s1490_s10 + $0xe0] sm:$0xff] %v639_v22 }
 0x204   : > { %672 = vst [vmem:[%s1490_s10 + $0xe8] sm:$0xff] %v640_v24  ;;  %v595_v25 = vpop.f32.mrb[14].mxu1 }
 0x205   : > { %v641_v26 = vmul.f32 %v1484_v27, %v595_v25  ;;  %v597_v29 = vpop.f32.mrb[15].mxu1 }
 0x206   : > { %v642_v30 = vmul.f32 %v1486_v28, %v597_v29 }
 0x207   : > { %673 = vst [vmem:[%s1490_s10 + $0xf0] sm:$0xff] %v641_v26 }
 0x208   : > { %674 = vst [vmem:[%s1490_s10 + $0xf8] sm:$0xff] %v642_v30 }
 0x209   : > { %1071 = shalt.err (!%p1068_p8)
}
 0x20a   : > { %s1072_s14 = scalar_lea.hbm %s1557_s26, 4096  ;;  %s1076_s27 = scalar_lea.hbm %s1665_s28, 16384 }
 0x20b   : > { %p1073_p13 = scmp.ne.s32.totalorder %s1557_s26, %s1072_s14  ;;  %p1077_p9 = scmp.lt.u32.totalorder %s1557_s26, %s1665_s28 }
 0x20c   : > { %p1078_p0 = scmp.lt.u32.totalorder %s1076_s27, %s1072_s14  ;;  %p1080_p2 = scmp.lt.u32.totalorder %s1072_s14, %s1557_s26 }
 0x20d   : > { %p1074_p4 = pnand %p1073_p13, %p1666_p5 }
 0x20e   : > { %p1079_p3 = por %p1078_p0, %p1077_p9 }
 0x20f   : > { %p1075_p12 = pneg %p1074_p4 }
 0x210   : > { %p1081_p10 = por %p1080_p2, %p1079_p3 }
 0x212   : > { %p1082_p7 = pnand %p1081_p10, %p1075_p12 }
 0x214   : > { %1085 = shalt.err (!%p1082_p7)
}
 0x215   : > { %s1190_s4 = smov 256   ;;  %s1191_s9 = smov 16  }
 0x216   : > { %892 = dma.vmem_to_hbm [thread:$0]  (%p1666_p5), %s1559_s22, 4096, %s1557_s26, %s676_s15, %s1190_s4, %s1190_s4, %s1191_s9  }
 0x217 PF: > { %s1667_s18 = sld [smem:[#allocation11_spill]]  ;;  %p906_p1 = scmp.ge.s32.totalorder %s1184_s25, 2 }
 0x218   : > { %p1668_p6 = scmp.ne.s32.totalorder %s1651_s12, 0 }
 0x21a   : > { %p902_p11 = pnand %p906_p1, %p1668_p6 }
 0x21d   : > { %s709_s29 = sand.u32 1, %s1667_s18  }
 0x21e   : > { %s710_s11 = scalar_lea.sflag [#allocation4], %s709_s29 }
 0x21f   : > { %1139 = dma.done.wait (!%p902_p11), %s710_s11, 4096  }
 0x220   : > { %1141 = vsyncadd (!%p902_p11), %s710_s11, 4294963200  ;;  %s23_s25 = sadd.s32 1, %s1184_s25   ;;  %s1669_s5 = sld [smem:[#allocation12_spill]] }
 0x221   : > { %p20_p8 = scmp.ge.s32.totalorder %s23_s25, 6   ;;  %s1670_s7 = sld [smem:[#allocation13_spill]] }
 0x222   : > { %s1671_s15 = smov %s1148_s16  ;;  %s1672_s16 = smov %s1152_s17 }
 0x223   : > { %s1673_s17 = smov %s1380_s6  ;;  %s1674_s18 = smov %s1160_s19 }
 0x224   : > { %s1675_s19 = smov %s1164_s20  ;;  %s1676_s20 = smov %s1321_s13 }
 0x225   : > { %s1677_s21 = smov %s1176_s23  ;;  %s1678_s22 = smov %s1180_s24 }
 0x226   : > { %s1679_s23 = smov %s1669_s5  ;;  %22 = sbr.rel (!%p20_p8) target bundleno = 14 (0xe), region = 100 }
 0x227   : > { %s1680_s24 = smov %s1670_s7 }
 0x22d   :  { %715 = vsyncpa [#allocation3], 1 }
 0x22e   :  { %717 = vsyncpa [#allocation3 + $0x1], 1 }
 0x22f   :  { %718 = vsyncpa [#allocation6], 1 }
 0x230   :  { %720 = vsyncpa [#allocation6 + $0x1], 1 }
 0x231   :  { %721 = vsyncpa [#allocation4], 1 }
 0x232   :  { %723 = vsyncpa [#allocation4 + $0x1], 1 }

</bundles_post_ra>
